<compile_context>
chip_gen: v7x
topology: tpu7x:2x2x1
jax: 0.10.0
libtpu: 0.0.40
codegen_flags: <defaults>
</compile_context>

<pallas_src>
import jax
import jax.numpy as jnp
from jax.experimental import pallas as pl
from jax.experimental.pallas import tpu as pltpu


def _round_up(a, b):
    return (a + b - 1) // b * b


def soft_fold_kernel(scal_ref, nb_ref, x_ref, o_ref):
    # scal_ref: SMEM (4,)   -> [crease, stretch, n.n + eps, 1/(n.n + eps)]
    # nb_ref:   VMEM (PP, PW) block-diagonal copies of n (zero-padded rows)
    # x_ref:    VMEM (TR, PW) lane-packed input rows
    crease = scal_ref[0]
    stretch = scal_ref[1]
    n_dot_n = scal_ref[2]
    inv_ndn = scal_ref[3]

    x = x_ref[...].astype(jnp.float32)       # (TR, PW)
    nb = nb_ref[...]                         # (PP, PW) float32

    # z[r, j] = <packed sub-row j of r, n>  (MXU, contraction over lanes).
    z = jax.lax.dot_general(
        x, nb, (((1,), (1,)), ((), ())),
        precision=jax.lax.Precision.HIGHEST,
        preferred_element_type=jnp.float32)          # (TR, PP)

    scales = z * inv_ndn
    p = jnp.clip(crease * (z - n_dot_n), -25.0, 25.0)
    sig = jax.nn.sigmoid(p)
    coef = stretch * sig * (1.0 - scales)            # (TR, PP)

    # delta[r, j*w:(j+1)*w] = coef[r, j] * n  (same block-diag matrix, MXU).
    # Zero-padded rows of nb make any extra coef columns harmless.
    delta = jax.lax.dot_general(
        coef, nb, (((1,), (0,)), ((), ())),
        precision=jax.lax.Precision.HIGHEST,
        preferred_element_type=jnp.float32)          # (TR, PW)

    o_ref[...] = (x + delta).astype(o_ref.dtype)


def soft_fold(x, n, crease, stretch, *, width, block_rows=1024):
    """Pallas SoftFold forward.

    x:       (B, D) with D <= width (zero-padded up to width, like the module)
    n:       (width,) normal vector
    crease, stretch: scalars
    returns: (B, width) array in x.dtype
    """
    B, D = x.shape
    if D > width:
        raise ValueError(
            f"Input dimension ({D}) is greater than fold width ({width})")
    if D < width:
        # TODO(synk): fold this zero-pad into the kernel's output write to avoid
        # the extra HBM round trip when padding is actually triggered.
        x = jnp.pad(x, ((0, 0), (0, width - D)))

    out_dtype = x.dtype

    # ---- lane packing: make the lane (last) axis a dense multiple of 128.
    if width < 128 and 128 % width == 0:
        pack = 128 // width
    else:
        pack = 1
    pw = pack * width

    bp = _round_up(B, pack)
    if bp != B:
        x = jnp.pad(x, ((0, bp - B), (0, 0)))
    rows = bp // pack
    xp = x.reshape(rows, pw)

    # ---- choose the batch tile (packed rows per grid step).
    if rows <= 8:
        tile = rows
        rows_p = rows
    else:
        tile = min(block_rows, _round_up(rows, 8))
        tile = max(8, (tile // 8) * 8)
        rows_p = _round_up(rows, tile)
        # Keep >= 2 grid steps so v7x can shard the parallel axis over 2 TCs.
        if rows_p // tile < 2 and tile > 8:
            tile = max(8, ((tile // 2) // 8) * 8)
            rows_p = _round_up(rows, tile)
    if rows_p != rows:
        xp = jnp.pad(xp, ((0, rows_p - rows), (0, 0)))
    grid = (rows_p // tile,)

    # ---- host-side precompute (hoisted out of the kernel).
    n32 = n.astype(jnp.float32)
    n_dot_n = jnp.dot(n32, n32) + jnp.float32(1e-8)
    inv_ndn = jnp.float32(1.0) / n_dot_n
    scalars = jnp.stack([
        jnp.asarray(crease, jnp.float32),
        jnp.asarray(stretch, jnp.float32),
        n_dot_n.astype(jnp.float32),
        inv_ndn.astype(jnp.float32),
    ])

    # Block-diagonal matrix nb[j, j*width:(j+1)*width] = n; pad to >= 8 rows
    # (sublane-aligned; padded rows are zero, so they contribute nothing).
    nb = jnp.kron(jnp.eye(pack, dtype=jnp.float32), n32.reshape(1, width))
    pp = max(pack, 8)
    if pp != pack:
        nb = jnp.pad(nb, ((0, pp - pack), (0, 0)))

    # VMEM footprint: 2 (in/out) x 2 (double-buffer) x tile*pw*4B + nb.
    # At the default block_rows=1024 and pw=128 that is ~2 MiB — comfortably
    # under v5e's 16 MiB scoped-VMEM default, so no vmem_limit_bytes needed.
    out = pl.pallas_call(
        soft_fold_kernel,
        out_shape=jax.ShapeDtypeStruct((rows_p, pw), out_dtype),
        grid_spec=pltpu.PrefetchScalarGridSpec(
            num_scalar_prefetch=0,
            grid=grid,
            in_specs=[
                pl.BlockSpec(memory_space=pltpu.MemorySpace.SMEM),  # scalars
                pl.BlockSpec((pp, pw), lambda i: (0, 0)),           # nb (same block every step)
                pl.BlockSpec((tile, pw), lambda i: (i, 0)),         # packed x tile
            ],
            out_specs=pl.BlockSpec((tile, pw), lambda i: (i, 0)),
        ),
        compiler_params=pltpu.CompilerParams(
            dimension_semantics=("parallel",)),
    )(scalars, nb, xp)

    return out.reshape(rows_p * pack, width)[:B]


def soft_fold_reference(x, n, crease, stretch, *, width):
    """Pure-JAX reference matching the PyTorch forward."""
    B, D = x.shape
    if width > D:
        x = jnp.pad(x, ((0, 0), (0, width - D)))
    eps = 1e-8
    z_dot_x = x @ n
    n_dot_n = n @ n + eps
    scales = z_dot_x / n_dot_n
    p = jnp.clip(crease * (z_dot_x - n_dot_n), -25.0, 25.0)
    sig = jax.nn.sigmoid(p)
    ortho_proj = (1.0 - scales)[:, None] * n
    return x + stretch * sig[:, None] * ortho_proj


if __name__ == "__main__":
    width = 32
    batch = 16

    key = jax.random.PRNGKey(0)
    k_n, k_crease, k_x = jax.random.split(key, 3)

    # Deterministic parameter init mirroring the module's __init__ shapes.
    n = jax.random.normal(k_n, (width,), dtype=jnp.float32) * (2.0 / width) ** 0.5
    # crease ~ bimodal dist in the module; pick a deterministic draw near +1.
    crease = jnp.float32(1.0 + 0.5 * jax.random.normal(k_crease, ()))
    stretch = jnp.float32(2.0)  # has_stretch=False -> fixed buffer 2.0

    x = jax.random.normal(k_x, (batch, width), dtype=jnp.float32)

    out = soft_fold(x, n, crease, stretch, width=width)
    out = jax.block_until_ready(out)

    ref = soft_fold_reference(x, n, crease, stretch, width=width)
    assert out.shape == (batch, width)
    assert jnp.allclose(out, ref, atol=1e-5, rtol=1e-5), "mismatch vs reference"

    print("KERNEL_OK")
</pallas_src>

<mosaic_0001>
module attributes {stable_mosaic.version = 11 : i64} {
  func.func @soft_fold_kernel(%arg0: i32, %arg1: memref<4xf32, #tpu.memory_space<smem>>, %arg2: memref<8x128xf32, #tpu.memory_space<vmem>>, %arg3: memref<4x128xf32, #tpu.memory_space<vmem>>, %arg4: memref<4x128xf32, #tpu.memory_space<vmem>>) attributes {dimension_semantics = [#tpu.dimension_semantics<parallel>], iteration_bounds = array<i64: 1>, scalar_prefetch = 0 : i64, scratch_operands = 0 : i64, tpu.core_type = #tpu.core_type<tc>, window_params = [{transform_indices = @transform_0, window_bounds = array<i64: 4>}, {pipeline_mode = #tpu.pipeline_mode<synchronous>, transform_indices = @transform_1, window_bounds = array<i64: 8, 128>}, {transform_indices = @transform_2, window_bounds = array<i64: 4, 128>}, {transform_indices = @transform_3, window_bounds = array<i64: 4, 128>}]} {
    %c0 = arith.constant 0 : index
    %0 = memref.load %arg1[%c0] : memref<4xf32, #tpu.memory_space<smem>>
    %c1 = arith.constant 1 : index
    %1 = memref.load %arg1[%c1] : memref<4xf32, #tpu.memory_space<smem>>
    %c2 = arith.constant 2 : index
    %2 = memref.load %arg1[%c2] : memref<4xf32, #tpu.memory_space<smem>>
    %c3 = arith.constant 3 : index
    %3 = memref.load %arg1[%c3] : memref<4xf32, #tpu.memory_space<smem>>
    %c0_0 = arith.constant 0 : index
    %c0_1 = arith.constant 0 : index
    %4 = vector.load %arg3[%c0_0, %c0_1] : memref<4x128xf32, #tpu.memory_space<vmem>>, vector<4x128xf32>
    %c0_2 = arith.constant 0 : index
    %c0_3 = arith.constant 0 : index
    %5 = vector.load %arg2[%c0_2, %c0_3] : memref<8x128xf32, #tpu.memory_space<vmem>>, vector<8x128xf32>
    %cst = arith.constant dense<0.000000e+00> : vector<4x8xf32>
    %6 = tpu.matmul %4, %5, %cst {dimension_numbers = #tpu.dot_dimension_numbers<[1], [1], [0], [0], [0, 0, 1, 0], [], []>, precision = #tpu.contract_precision<fp32>} : vector<4x128xf32>, vector<8x128xf32>, vector<4x8xf32> -> vector<4x8xf32>
    %7 = vector.broadcast %3 : f32 to vector<4x8xf32>
    %8 = arith.mulf %6, %7 : vector<4x8xf32>
    %9 = vector.broadcast %2 : f32 to vector<4x8xf32>
    %10 = arith.subf %6, %9 : vector<4x8xf32>
    %11 = vector.broadcast %0 : f32 to vector<4x8xf32>
    %12 = arith.mulf %11, %10 : vector<4x8xf32>
    %cst_4 = arith.constant -2.500000e+01 : f32
    %cst_5 = arith.constant 2.500000e+01 : f32
    %13 = vector.broadcast %cst_4 : f32 to vector<4x8xf32>
    %14 = arith.maximumf %13, %12 : vector<4x8xf32>
    %15 = vector.broadcast %cst_5 : f32 to vector<4x8xf32>
    %16 = arith.minimumf %15, %14 : vector<4x8xf32>
    %17 = arith.negf %16 : vector<4x8xf32>
    %18 = math.exp %17 : vector<4x8xf32>
    %cst_6 = arith.constant 1.000000e+00 : f32
    %19 = vector.broadcast %cst_6 : f32 to vector<4x8xf32>
    %20 = arith.addf %19, %18 : vector<4x8xf32>
    %21 = arith.divf %19, %20 : vector<4x8xf32>
    %22 = vector.broadcast %1 : f32 to vector<4x8xf32>
    %23 = arith.mulf %22, %21 : vector<4x8xf32>
    %cst_7 = arith.constant 1.000000e+00 : f32
    %24 = vector.broadcast %cst_7 : f32 to vector<4x8xf32>
    %25 = arith.subf %24, %8 : vector<4x8xf32>
    %26 = arith.mulf %23, %25 : vector<4x8xf32>
    %cst_8 = arith.constant dense<0.000000e+00> : vector<4x128xf32>
    %27 = tpu.matmul %26, %5, %cst_8 {dimension_numbers = #tpu.dot_dimension_numbers<[1], [0], [0], [1], [0, 0, 1, 1], [], []>, precision = #tpu.contract_precision<fp32>} : vector<4x8xf32>, vector<8x128xf32>, vector<4x128xf32> -> vector<4x128xf32>
    %28 = arith.addf %4, %27 : vector<4x128xf32>
    %c0_9 = arith.constant 0 : index
    %c0_10 = arith.constant 0 : index
    %29 = vector.load %arg4[%c0_9, %c0_10] : memref<4x128xf32, #tpu.memory_space<vmem>>, vector<4x128xf32>
    tpu.vector_store %arg4[%c0_9, %c0_10], %28 {strides = array<i32>} : memref<4x128xf32, #tpu.memory_space<vmem>>, vector<4x128xf32>,
    return
  }
  func.func @transform_0(%arg0: i32) -> i32 {
    %c0_i32 = arith.constant 0 : i32
    %c0_i32_0 = arith.constant 0 : i32
    return %c0_i32 : i32
  }
  func.func @transform_1(%arg0: i32) -> (i32, i32) {
    %c0_i32 = arith.constant 0 : i32
    %c0_i32_0 = arith.constant 0 : i32
    %c0_i32_1 = arith.constant 0 : i32
    return %c0_i32, %c0_i32_0 : i32, i32
  }
  func.func @transform_2(%arg0: i32) -> (i32, i32) {
    %c0_i32 = arith.constant 0 : i32
    %c0_i32_0 = arith.constant 0 : i32
    return %arg0, %c0_i32 : i32, i32
  }
  func.func @transform_3(%arg0: i32) -> (i32, i32) {
    %c0_i32 = arith.constant 0 : i32
    %c0_i32_0 = arith.constant 0 : i32
    return %arg0, %c0_i32 : i32, i32
  }
}

</mosaic_0001>

<bundles_post_ra>
// kernel: tpu_custom_call.1
= control target key start
LH: loop header
LB: loop body
LE: loop exit
PB: predicated region body
PF: predicated region fallthrough
CT: control target
= control target key end

     0   :  { %8 = vsyncpa [#allocation5], 0  ;;  %s1269_s0 = inlined_call_operand.hbm [shape: f32[4], index: 0, kind: input, shape index: {}]   ;;  %s1270_s1 = inlined_call_operand.hbm [shape: f32[8,128], index: 1, kind: input, shape index: {}]   ;;  %s1271_s2 = inlined_call_operand.vmem [shape: f32[4,128], index: 2, kind: input, shape index: {}]   ;;  %s1272_s3 = inlined_call_operand.hbm [shape: f32[4,128], index: 3, kind: output, shape index: {}]  }
   0x1   :  { %9 = vsyncpa [#allocation3], 0 }
   0x2   :  { %10 = vsyncpa [#allocation4], 0  ;;  %s1084_s14 = scalar_lea.hbm %s1269_s0, 16 }
   0x3   :  { %p1085_p0 = scmp.ne.s32.totalorder %s1269_s0, %s1084_s14  ;;  %p1088_p1 = scmp.lt.u32.totalorder %s1084_s14, %s1269_s0 }
   0x5   :  { %p1090_p2 = pnand %p1088_p1, %p1085_p0 }
   0x7   :  { %1093 = shalt.err (!%p1090_p2)
}
   0x8   :  { %s1144_s19 = smov [#allocation2]   ;;  %s1145_s22 = smov [#allocation6]  }
   0x9   :  { %18 = dma.hbm_to_smem %s1269_s0, 16, %s1144_s19, [#allocation5]  }
   0xa   :  { %s25_s23 = sshll.u32 %s1145_s22, 4  ;;  %s1094_s26 = scalar_lea.hbm %s1270_s1, 128  ;;  %s26_s23 = int_to_ptr.vmem [resolvable:$true] %s25_s23 }
   0xb   :  { %p1095_p3 = scmp.ne.s32.totalorder %s1270_s1, %s1094_s26  ;;  %p1098_p4 = scmp.lt.u32.totalorder %s1094_s26, %s1270_s1 }
   0xd   :  { %p1100_p5 = pnand %p1098_p4, %p1095_p3 }
   0xf   :  { %1103 = shalt.err (!%p1100_p5)
}
  0x10   :  { %s1104_s4 = scalar_lea.vmem %s26_s23, 128  ;;  %p1109_p7 = scmp.lt.s32.totalorder %s26_s23, %s26_s23 }
  0x11   :  { %p1105_p6 = scmp.ne.s32.totalorder %s26_s23, %s1104_s4  ;;  %p1110_p8 = scmp.lt.s32.totalorder %s1104_s4, %s1104_s4 }
  0x13   :  { %p1111_p9 = por %p1110_p8, %p1109_p7 }
  0x15   :  { %p1112_p10 = pnand %p1111_p9, %p1105_p6 }
  0x17   :  { %1115 = shalt.err (!%p1112_p10)
}
  0x18   :  { %28 = dma.hbm_to_vmem [thread:$0]  %s1270_s1, 128, %s26_s23, [#allocation3]  }
  0x19   :  { %1138 = dma.done.wait [#allocation5], 16  }
  0x1a   :  { %1139 = vsyncadd [#allocation5], 4294967280 }
  0x1b   :  { %1140 = dma.done.wait [#allocation3], 128  }
  0x1c   :  { %1141 = vsyncadd [#allocation3], 4294967168 }
  0x1d   :  { %37 = sfence }
  0x1e   :  { %v43_v0 = vld [vmem:[#allocation6] sm:$0xff]  ;;  %v1196_v1 = vld [vmem:[%s1271_s2] sm:$0xf]  ;;  %v1146_v2 = vmov 0.0   ;;  %vm1147_vm0 = vmmov 0   ;;  %s977_s1 = sld [smem:[#allocation2 + $0x2]] }
  0x1f   :  { %1005 = vmatprep.subr.mxu0 %v1146_v2  ;;  %v1199_v3 = vand.u32 4294901760, %v43_v0  ;;  %1007 = vmatprep.mubr.msk.f32.mxu0 %vm1147_vm0, %v1146_v2  ;;  %v110_v4 = vand.u32 4294901760, %v1196_v1  ;;  %s38_s2 = sld [smem:[#allocation2]]  ;;  %s978_s8 = sld [smem:[#allocation2 + $0x3]]  ;;  %vm508_vm1 = vcmask 64512  }
  0x20   :  { %1035 = vmatprep.subr.mxu1 %v1146_v2  ;;  %1037 = vmatprep.mubr.msk.f32.mxu1 %vm1147_vm0, %v1146_v2  ;;  %s976_s9 = sld [smem:[#allocation2 + $0x1]]  ;;  %s1148_s10 = smov [#allocation7]  }
  0x21   :  { %1006 = vmatpush3.xpose.msra.mxu0 %v1199_v3  ;;  %v111_v5 = vsub.f32 %v1196_v1, %v110_v4  ;;  %v1210_v6 = vsub.f32 %v43_v0, %v1199_v3  ;;  %1036 = vmatpush3.msra.mxu1 %v1199_v3  ;;  %s966_s11 = sshll.u32 %s1148_s10, 4  ;;  %s967_s11 = int_to_ptr.vmem [resolvable:$true] %s966_s11 }
  0x22   :  { %1010 = vmatprep.subr.mxu0 %v1146_v2  ;;  %1040 = vmatprep.subr.mxu1 %v1146_v2  ;;  %s1116_s12 = scalar_lea.vmem %s967_s11, 64  ;;  %p1121_p12 = scmp.lt.s32.totalorder %s967_s11, %s967_s11 }
  0x23   :  { %v112_v7 = vand.u32 4294901760, %v111_v5  ;;  %v1216_v8 = vand.u32 4294901760, %v1210_v6  ;;  %p1117_p11 = scmp.ne.s32.totalorder %s967_s11, %s1116_s12  ;;  %p1122_p13 = scmp.lt.s32.totalorder %s1116_s12, %s1116_s12 }
  0x24   :  { %v492_v13 = vstv %s977_s1 }
  0x25   :  { %v113_v9 = vsub.f32 %v111_v5, %v112_v7  ;;  %v124_v10 = vsub.f32 %v1210_v6, %v1216_v8  ;;  %v494_v15 = vstv %s38_s2  ;;  %v490_v23 = vstv %s978_s8  ;;  %p1123_p0 = por %p1122_p13, %p1121_p12 }
  0x26   :  { %v504_v25 = vstv %s976_s9 }
  0x27   :  { %v114_v11 = vand.u32 4294901760, %v113_v9  ;;  %v125_v12 = vand.u32 4294901760, %v124_v10  ;;  %p1124_p1 = pnand %p1123_p0, %p1117_p11 }
  0x29   :  { %1008 = vmatmul.mubr.f32.vlgmr.msra.gmra.mrb[0].mxu0 %v114_v11 }
  0x2a   :  { %1011 = vmatpush3.xpose.msra.mxu0 %v125_v12  ;;  %1012 = vmatprep.mubr.msk.f32.mxu0 %vm1147_vm0, %v1146_v2 }
  0x2b   :  { %1015 = vmatprep.subr.mxu0 %v1146_v2 }
  0x31   :  { %1013 = vmatmul.mubr.f32.vlgmr.msra.gmra.mrb[0].mxu0 %v110_v4 }
  0x32   :  { %1016 = vmatpush3.xpose.msra.mxu0 %v1210_v6  ;;  %1017 = vmatprep.mubr.msk.f32.mxu0 %vm1147_vm0, %v1146_v2 }
  0x33   :  { %1020 = vmatprep.subr.mxu0 %v1146_v2 }
  0x39   :  { %1018 = vmatmul.mubr.f32.vlgmr.msra.gmra.mrb[0].mxu0 %v111_v5 }
  0x3a   :  { %1021 = vmatpush3.xpose.msra.mxu0 %v1199_v3  ;;  %1022 = vmatprep.mubr.msk.f32.mxu0 %vm1147_vm0, %v1146_v2 }
  0x3b   :  { %1025 = vmatprep.subr.mxu0 %v1146_v2 }
  0x41   :  { %1023 = vmatmul.mubr.f32.vlgmr.msra.gmra.mrb[0].mxu0 %v112_v7 }
  0x42   :  { %1026 = vmatpush3.xpose.msra.mxu0 %v1216_v8  ;;  %1027 = vmatprep.mubr.msk.f32.mxu0 %vm1147_vm0, %v1146_v2 }
  0x43   :  { %1030 = vmatprep.subr.mxu0 %v1146_v2 }
  0x49   :  { %1028 = vmatmul.mubr.f32.vlgmr.msra.gmra.mrb[0].mxu0 %v110_v4 }
  0x4a   :  { %1031 = vmatpush3.xpose.msra.mxu0 %v1199_v3  ;;  %1032 = vmatprep.mubr.msk.f32.mxu0 %vm1147_vm0, %v1146_v2 }
  0x51   :  { %1033 = vmatmul.mubr.f32.vlgmr.msra.gmra.mrb[0].mxu0 %v110_v4 }
 0x124   :  { %v486_v14 = vpop.f32.mrb[0].mxu0 }
 0x125   :  { %v493_v16 = vsub.f32 %v486_v14, %v492_v13  ;;  %v1034_v17 = vpop.f32.mrb[1].mxu0  ;;  %v491_v24 = vmul.f32 %v490_v23, %v486_v14 }
 0x127   :  { %v495_v18 = vmul.f32 %v494_v15, %v493_v16  ;;  %v506_v28 = vsub.f32 1.0, %v491_v24 }
 0x129   :  { %v979_v19 = vclamps-f32 %v495_v18, 25.0 }
 0x12b   :  { %v980_v20 = vmul.f32 -1.442695, %v979_v19 }
 0x12d   :  { %1080 = vpow2.f32 %v980_v20 }
 0x137   :  { %v1081_v21 = vpop.eup %1080 }
 0x138   :  { %v501_v22 = vadd.f32 1.0, %v1081_v21 }
 0x13a   :  { %1082 = vrcp.f32 %v501_v22 }
 0x144   :  { %v1083_v26 = vpop.eup %1082 }
 0x145   :  { %v505_v27 = vmul.f32 %v1083_v26, %v504_v25 }
 0x147   :  { %v507_v29 = vmul.f32 %v506_v28, %v505_v27 }
 0x149   :  { %v510_v30 = vsel %vm508_vm1, %v507_v29, 0 }
 0x14a   :  { %v578_v31 = vand.u32 4294901760, %v510_v30 }
 0x14c   :  { %v579_v32 = vsub.f32 %v510_v30, %v578_v31 }
 0x14e   :  { %v580_v33 = vand.u32 4294901760, %v579_v32 }
 0x150   :  { %v581_v34 = vsub.f32 %v579_v32, %v580_v33 }
 0x152   :  { %v582_v35 = vand.u32 4294901760, %v581_v34 }
 0x154   :  { %1038 = vmatmul.mubr.f32.vlgmr.msra.gmra.mrb[0].mxu1 %v582_v35 }
 0x155   :  { %1041 = vmatpush3.msra.mxu1 %v125_v12  ;;  %1042 = vmatprep.mubr.msk.f32.mxu1 %vm1147_vm0, %v1146_v2 }
 0x156   :  { %1045 = vmatprep.subr.mxu1 %v1146_v2 }
 0x158   :  { %1043 = vmatmul.mubr.f32.vlgmr.msra.gmra.mrb[2].mxu1 %v578_v31 }
 0x159   :  { %1046 = vmatpush3.msra.mxu1 %v1210_v6  ;;  %1047 = vmatprep.mubr.msk.f32.mxu1 %vm1147_vm0, %v1146_v2 }
 0x15a   :  { %1050 = vmatprep.subr.mxu1 %v1146_v2 }
 0x15c   :  { %1048 = vmatmul.mubr.f32.vlgmr.msra.gmra.mrb[4].mxu1 %v579_v32 }
 0x15d   :  { %1051 = vmatpush3.msra.mxu1 %v1199_v3  ;;  %1052 = vmatprep.mubr.msk.f32.mxu1 %vm1147_vm0, %v1146_v2 }
 0x15e   :  { %1055 = vmatprep.subr.mxu1 %v1146_v2 }
 0x160   :  { %1053 = vmatmul.mubr.f32.vlgmr.msra.gmra.mrb[6].mxu1 %v580_v33 }
 0x161   :  { %1056 = vmatpush3.msra.mxu1 %v1216_v8  ;;  %1057 = vmatprep.mubr.msk.f32.mxu1 %vm1147_vm0, %v1146_v2 }
 0x162   :  { %1060 = vmatprep.subr.mxu1 %v1146_v2 }
 0x164   :  { %1058 = vmatmul.mubr.f32.vlgmr.msra.gmra.mrb[8].mxu1 %v578_v31 }
 0x165   :  { %1061 = vmatpush3.msra.mxu1 %v1199_v3  ;;  %1062 = vmatprep.mubr.msk.f32.mxu1 %vm1147_vm0, %v1146_v2 }
 0x168   :  { %1063 = vmatmul.mubr.f32.vlgmr.msra.gmra.mrb[10].mxu1 %v578_v31 }
 0x227   :  { %v584_v36 = vpop.f32.mrb[0].mxu1 }
 0x228   :  { %v1039_v37 = vpop.f32.mrb[1].mxu1 }
 0x22b   :  { %v660_v38 = vpop.f32.mrb[2].mxu1 }
 0x22c   :  { %v661_v39 = vadd.f32 %v660_v38, %v584_v36  ;;  %v1044_v40 = vpop.f32.mrb[3].mxu1 }
 0x22f   :  { %v734_v41 = vpop.f32.mrb[4].mxu1 }
 0x230   :  { %v735_v42 = vadd.f32 %v734_v41, %v661_v39  ;;  %v1049_v43 = vpop.f32.mrb[5].mxu1 }
 0x233   :  { %v808_v44 = vpop.f32.mrb[6].mxu1 }
 0x234   :  { %v809_v45 = vadd.f32 %v808_v44, %v735_v42  ;;  %v1054_v46 = vpop.f32.mrb[7].mxu1 }
 0x237   :  { %v882_v47 = vpop.f32.mrb[8].mxu1 }
 0x238   :  { %v883_v48 = vadd.f32 %v882_v47, %v809_v45  ;;  %v1059_v49 = vpop.f32.mrb[9].mxu1 }
 0x23b   :  { %v954_v50 = vpop.f32.mrb[10].mxu1 }
 0x23c   :  { %v955_v51 = vadd.f32 %v954_v50, %v883_v48  ;;  %v1064_v52 = vpop.f32.mrb[11].mxu1 }
 0x23e   :  { %v958_v53 = vadd.f32 %v955_v51, %v1196_v1 }
 0x240   :  { %959 = vst [vmem:[#allocation7] sm:$0xf] %v958_v53 }
 0x241   :  { %1127 = shalt.err (!%p1124_p1)
}
 0x242   :  { %s1128_s15 = scalar_lea.hbm %s1272_s3, 64 }
 0x243   :  { %p1129_p2 = scmp.ne.s32.totalorder %s1272_s3, %s1128_s15  ;;  %p1132_p3 = scmp.lt.u32.totalorder %s1128_s15, %s1272_s3 }
 0x245   :  { %p1134_p4 = pnand %p1132_p3, %p1129_p2 }
 0x247   :  { %1137 = shalt.err (!%p1134_p4)
}
 0x248   :  { %969 = dma.vmem_to_hbm [thread:$0]  %s967_s11, 64, %s1272_s3, [#allocation4]  }
 0x249   :  { %1142 = dma.done.wait [#allocation4], 64  }
 0x24a   :  { %1143 = vsyncadd [#allocation4], 4294967232 }
 0x24b   :  { %973 = vsyncpa [#allocation3], 1 }
 0x24c   :  { %974 = vsyncpa [#allocation4], 1 }
 0x24d   :  { %975 = vsyncpa [#allocation5], 1 }

</bundles_post_ra>
